<compile_context>
chip_gen: v5e
topology: v5e:2x2
jax: 0.10.0
libtpu: 0.0.40
codegen_flags: <defaults>
</compile_context>

<pallas_src>
import jax
import jax.numpy as jnp
from jax.experimental import pallas as pl
from jax.experimental.pallas import tpu as pltpu

HIDDEN_PAD = 128  # all layer widths zero-padded to one lane-dense width


def mlp_kernel(x_ref, w_ref, b_ref, o_ref):
    # x_ref : [TB, 128]      bf16  (batch tile, feature-padded)
    # w_ref : [L, 128, 128]  bf16  (VMEM-resident across all grid steps)
    # b_ref : [L, 1, 128]    f32
    # o_ref : [TB, 128]      f32
    n_layers = w_ref.shape[0]
    h = x_ref[...]  # bf16

    # Hidden layers: MXU matmul (bf16 x bf16 -> f32 acc) + bias + relu.
    for i in range(n_layers - 1):
        z = jnp.dot(h, w_ref[i], preferred_element_type=jnp.float32) + b_ref[i]
        h = jnp.maximum(z, 0.0).astype(jnp.bfloat16)
        # dropout(0.3) -> identity in eval mode

    # Final linear layer, no activation; store lane-dense f32 tile.
    z = jnp.dot(h, w_ref[n_layers - 1],
                preferred_element_type=jnp.float32) + b_ref[n_layers - 1]
    o_ref[...] = z.astype(o_ref.dtype)


def mlp_forward(x, params, *, tile_b=256):
    """x: [B, input_dim] f32.  params: list of (W [in,out] f32, b [1,out] f32)."""
    B, in_dim = x.shape
    out_dim = params[-1][0].shape[1]
    n_layers = len(params)
    H = HIDDEN_PAD

    # ---- pack weights/biases into single zero-padded buffers ----
    w_pack = jnp.zeros((n_layers, H, H), jnp.float32)
    b_pack = jnp.zeros((n_layers, 1, H), jnp.float32)
    for i, (w, b) in enumerate(params):
        fi, fo = w.shape
        w_pack = w_pack.at[i, :fi, :fo].set(w)
        b_pack = b_pack.at[i, 0, :fo].set(b.reshape(-1))
    w_pack = w_pack.astype(jnp.bfloat16)

    # ---- pad batch to a multiple of tile_b and features to 128 lanes ----
    b_pad = pl.cdiv(B, tile_b) * tile_b
    x_pad = jnp.zeros((b_pad, H), jnp.bfloat16)
    x_pad = x_pad.at[:B, :in_dim].set(x.astype(jnp.bfloat16))

    grid = (b_pad // tile_b,)

    flops = 2 * b_pad * H * H * n_layers
    bytes_accessed = (x_pad.size * 2 + w_pack.size * 2
                      + b_pack.size * 4 + b_pad * H * 4)

    out = pl.pallas_call(
        mlp_kernel,
        out_shape=jax.ShapeDtypeStruct((b_pad, H), jnp.float32),
        grid=grid,
        in_specs=[
            # activation tile: streamed over the batch grid
            pl.BlockSpec((tile_b, H), lambda i: (i, 0)),
            # packed weights: constant block index -> DMA'd once, stays resident
            pl.BlockSpec((n_layers, H, H), lambda i: (0, 0, 0)),
            # packed biases: constant block index -> DMA'd once, stays resident
            pl.BlockSpec((n_layers, 1, H), lambda i: (0, 0, 0)),
        ],
        out_specs=pl.BlockSpec((tile_b, H), lambda i: (i, 0)),
        compiler_params=pltpu.CompilerParams(
            dimension_semantics=("parallel",)),
        cost_estimate=pl.CostEstimate(flops=flops, transcendentals=0,
                                      bytes_accessed=bytes_accessed),
    )(x_pad, w_pack, b_pack)

    return out[:B, :out_dim]


def init_params(key, input_dim, output_dim):
    """Deterministic init matching PyTorch nn.Linear shapes (U(-1/sqrt(fan_in), +))."""
    dims = [input_dim, 128, 64, 32, 16, output_dim]
    params = []
    for i in range(len(dims) - 1):
        fan_in, fan_out = dims[i], dims[i + 1]
        key, kw, kb = jax.random.split(key, 3)
        bound = 1.0 / jnp.sqrt(jnp.float32(fan_in))
        # stored as [in, out] (transpose of PyTorch's [out, in]) for x @ W
        w = jax.random.uniform(kw, (fan_in, fan_out), jnp.float32, -bound, bound)
        b = jax.random.uniform(kb, (1, fan_out), jnp.float32, -bound, bound)
        params.append((w, b))
    return params


def reference_forward_f32(x, params):
    """Pure f32 reference (original PyTorch eval-mode semantics)."""
    h = x
    for i, (w, b) in enumerate(params):
        h = h @ w + b
        if i < len(params) - 1:
            h = jnp.maximum(h, 0.0)
    return h


def reference_forward_bf16(x, params):
    """Reference that mirrors the kernel's bf16-weights / f32-accumulate math."""
    h = x.astype(jnp.bfloat16)
    for i, (w, b) in enumerate(params):
        z = jnp.dot(h, w.astype(jnp.bfloat16),
                    preferred_element_type=jnp.float32) + b
        if i < len(params) - 1:
            h = jnp.maximum(z, 0.0).astype(jnp.bfloat16)
        else:
            h = z
    return h


if __name__ == "__main__":
    # load_diabetes(): 10 input features, 1 regression target, 442 samples.
    input_dim, output_dim = 10, 1
    batch = 442

    key = jax.random.PRNGKey(0)
    key, kx = jax.random.split(key)
    x = jax.random.normal(kx, (batch, input_dim), jnp.float32)

    params = init_params(key, input_dim, output_dim)

    out = mlp_forward(x, params, tile_b=256)
    out = jax.block_until_ready(out)
    assert out.shape == (batch, output_dim), out.shape

    # Tight check against a reference using the same bf16 quantization as the kernel.
    ref_bf16 = reference_forward_bf16(x, params)
    assert jnp.allclose(out, ref_bf16, atol=1e-2, rtol=1e-2), \
        "mismatch vs bf16-mirrored JAX reference"

    # Loose sanity check against the pure-f32 module semantics.
    ref_f32 = reference_forward_f32(x, params)
    assert jnp.allclose(out, ref_f32, atol=1e-1, rtol=1e-1), \
        "mismatch vs f32 JAX reference"

    print("KERNEL_OK")
</pallas_src>

<mosaic_0001>
module attributes {stable_mosaic.version = 11 : i64} {
  func.func @mlp_kernel(%arg0: i32, %arg1: memref<256x128xbf16, #tpu.memory_space<vmem>>, %arg2: memref<5x128x128xbf16, #tpu.memory_space<vmem>>, %arg3: memref<5x1x128xf32, #tpu.memory_space<vmem>>, %arg4: memref<256x128xf32, #tpu.memory_space<vmem>>) attributes {dimension_semantics = [#tpu.dimension_semantics<parallel>], iteration_bounds = array<i64: 2>, scalar_prefetch = 0 : i64, scratch_operands = 0 : i64, tpu.core_type = #tpu.core_type<tc>, window_params = [{transform_indices = @transform_0, window_bounds = array<i64: 256, 128>}, {pipeline_mode = #tpu.pipeline_mode<synchronous>, transform_indices = @transform_1, window_bounds = array<i64: 5, 128, 128>}, {pipeline_mode = #tpu.pipeline_mode<synchronous>, transform_indices = @transform_2, window_bounds = array<i64: 5, 1, 128>}, {transform_indices = @transform_3, window_bounds = array<i64: 256, 128>}]} {
    %c0 = arith.constant 0 : index
    %c0_0 = arith.constant 0 : index
    %0 = vector.load %arg1[%c0, %c0_0] : memref<256x128xbf16, #tpu.memory_space<vmem>>, vector<256x128xbf16>
    %c0_1 = arith.constant 0 : index
    %c0_2 = arith.constant 0 : index
    %c0_3 = arith.constant 0 : index
    %1 = vector.load %arg2[%c0_1, %c0_2, %c0_3] : memref<5x128x128xbf16, #tpu.memory_space<vmem>>, vector<1x128x128xbf16>
    %2 = vector.shape_cast %1 : vector<1x128x128xbf16> to vector<128x128xbf16>
    %cst = arith.constant dense<0.000000e+00> : vector<256x128xf32>
    %3 = tpu.matmul %0, %2, %cst {dimension_numbers = #tpu.dot_dimension_numbers<[1], [0], [0], [1], [0, 0, 1, 1], [], []>} : vector<256x128xbf16>, vector<128x128xbf16>, vector<256x128xf32> -> vector<256x128xf32>
    %c0_4 = arith.constant 0 : index
    %c0_5 = arith.constant 0 : index
    %c0_6 = arith.constant 0 : index
    %4 = vector.load %arg3[%c0_4, %c0_5, %c0_6] : memref<5x1x128xf32, #tpu.memory_space<vmem>>, vector<1x1x128xf32>
    %5 = vector.shape_cast %4 : vector<1x1x128xf32> to vector<1x128xf32>
    %6 = vector.broadcast %5 : vector<1x128xf32> to vector<256x128xf32>
    %7 = arith.addf %3, %6 : vector<256x128xf32>
    %cst_7 = arith.constant 0.000000e+00 : f32
    %8 = vector.broadcast %cst_7 : f32 to vector<256x128xf32>
    %9 = arith.maximumf %7, %8 : vector<256x128xf32>
    %10 = arith.truncf %9 : vector<256x128xf32> to vector<256x128xbf16>
    %c1 = arith.constant 1 : index
    %c0_8 = arith.constant 0 : index
    %c0_9 = arith.constant 0 : index
    %11 = vector.load %arg2[%c1, %c0_8, %c0_9] : memref<5x128x128xbf16, #tpu.memory_space<vmem>>, vector<1x128x128xbf16>
    %12 = vector.shape_cast %11 : vector<1x128x128xbf16> to vector<128x128xbf16>
    %cst_10 = arith.constant dense<0.000000e+00> : vector<256x128xf32>
    %13 = tpu.matmul %10, %12, %cst_10 {dimension_numbers = #tpu.dot_dimension_numbers<[1], [0], [0], [1], [0, 0, 1, 1], [], []>} : vector<256x128xbf16>, vector<128x128xbf16>, vector<256x128xf32> -> vector<256x128xf32>
    %c1_11 = arith.constant 1 : index
    %c0_12 = arith.constant 0 : index
    %c0_13 = arith.constant 0 : index
    %14 = vector.load %arg3[%c1_11, %c0_12, %c0_13] : memref<5x1x128xf32, #tpu.memory_space<vmem>>, vector<1x1x128xf32>
    %15 = vector.shape_cast %14 : vector<1x1x128xf32> to vector<1x128xf32>
    %16 = vector.broadcast %15 : vector<1x128xf32> to vector<256x128xf32>
    %17 = arith.addf %13, %16 : vector<256x128xf32>
    %cst_14 = arith.constant 0.000000e+00 : f32
    %18 = vector.broadcast %cst_14 : f32 to vector<256x128xf32>
    %19 = arith.maximumf %17, %18 : vector<256x128xf32>
    %20 = arith.truncf %19 : vector<256x128xf32> to vector<256x128xbf16>
    %c2 = arith.constant 2 : index
    %c0_15 = arith.constant 0 : index
    %c0_16 = arith.constant 0 : index
    %21 = vector.load %arg2[%c2, %c0_15, %c0_16] : memref<5x128x128xbf16, #tpu.memory_space<vmem>>, vector<1x128x128xbf16>
    %22 = vector.shape_cast %21 : vector<1x128x128xbf16> to vector<128x128xbf16>
    %cst_17 = arith.constant dense<0.000000e+00> : vector<256x128xf32>
    %23 = tpu.matmul %20, %22, %cst_17 {dimension_numbers = #tpu.dot_dimension_numbers<[1], [0], [0], [1], [0, 0, 1, 1], [], []>} : vector<256x128xbf16>, vector<128x128xbf16>, vector<256x128xf32> -> vector<256x128xf32>
    %c2_18 = arith.constant 2 : index
    %c0_19 = arith.constant 0 : index
    %c0_20 = arith.constant 0 : index
    %24 = vector.load %arg3[%c2_18, %c0_19, %c0_20] : memref<5x1x128xf32, #tpu.memory_space<vmem>>, vector<1x1x128xf32>
    %25 = vector.shape_cast %24 : vector<1x1x128xf32> to vector<1x128xf32>
    %26 = vector.broadcast %25 : vector<1x128xf32> to vector<256x128xf32>
    %27 = arith.addf %23, %26 : vector<256x128xf32>
    %cst_21 = arith.constant 0.000000e+00 : f32
    %28 = vector.broadcast %cst_21 : f32 to vector<256x128xf32>
    %29 = arith.maximumf %27, %28 : vector<256x128xf32>
    %30 = arith.truncf %29 : vector<256x128xf32> to vector<256x128xbf16>
    %c3 = arith.constant 3 : index
    %c0_22 = arith.constant 0 : index
    %c0_23 = arith.constant 0 : index
    %31 = vector.load %arg2[%c3, %c0_22, %c0_23] : memref<5x128x128xbf16, #tpu.memory_space<vmem>>, vector<1x128x128xbf16>
    %32 = vector.shape_cast %31 : vector<1x128x128xbf16> to vector<128x128xbf16>
    %cst_24 = arith.constant dense<0.000000e+00> : vector<256x128xf32>
    %33 = tpu.matmul %30, %32, %cst_24 {dimension_numbers = #tpu.dot_dimension_numbers<[1], [0], [0], [1], [0, 0, 1, 1], [], []>} : vector<256x128xbf16>, vector<128x128xbf16>, vector<256x128xf32> -> vector<256x128xf32>
    %c3_25 = arith.constant 3 : index
    %c0_26 = arith.constant 0 : index
    %c0_27 = arith.constant 0 : index
    %34 = vector.load %arg3[%c3_25, %c0_26, %c0_27] : memref<5x1x128xf32, #tpu.memory_space<vmem>>, vector<1x1x128xf32>
    %35 = vector.shape_cast %34 : vector<1x1x128xf32> to vector<1x128xf32>
    %36 = vector.broadcast %35 : vector<1x128xf32> to vector<256x128xf32>
    %37 = arith.addf %33, %36 : vector<256x128xf32>
    %cst_28 = arith.constant 0.000000e+00 : f32
    %38 = vector.broadcast %cst_28 : f32 to vector<256x128xf32>
    %39 = arith.maximumf %37, %38 : vector<256x128xf32>
    %40 = arith.truncf %39 : vector<256x128xf32> to vector<256x128xbf16>
    %c4 = arith.constant 4 : index
    %c0_29 = arith.constant 0 : index
    %c0_30 = arith.constant 0 : index
    %41 = vector.load %arg2[%c4, %c0_29, %c0_30] : memref<5x128x128xbf16, #tpu.memory_space<vmem>>, vector<1x128x128xbf16>
    %42 = vector.shape_cast %41 : vector<1x128x128xbf16> to vector<128x128xbf16>
    %cst_31 = arith.constant dense<0.000000e+00> : vector<256x128xf32>
    %43 = tpu.matmul %40, %42, %cst_31 {dimension_numbers = #tpu.dot_dimension_numbers<[1], [0], [0], [1], [0, 0, 1, 1], [], []>} : vector<256x128xbf16>, vector<128x128xbf16>, vector<256x128xf32> -> vector<256x128xf32>
    %c4_32 = arith.constant 4 : index
    %c0_33 = arith.constant 0 : index
    %c0_34 = arith.constant 0 : index
    %44 = vector.load %arg3[%c4_32, %c0_33, %c0_34] : memref<5x1x128xf32, #tpu.memory_space<vmem>>, vector<1x1x128xf32>
    %45 = vector.shape_cast %44 : vector<1x1x128xf32> to vector<1x128xf32>
    %46 = vector.broadcast %45 : vector<1x128xf32> to vector<256x128xf32>
    %47 = arith.addf %43, %46 : vector<256x128xf32>
    %c0_35 = arith.constant 0 : index
    %c0_36 = arith.constant 0 : index
    %48 = vector.load %arg4[%c0_35, %c0_36] : memref<256x128xf32, #tpu.memory_space<vmem>>, vector<256x128xf32>
    tpu.vector_store %arg4[%c0_35, %c0_36], %47 {strides = array<i32>} : memref<256x128xf32, #tpu.memory_space<vmem>>, vector<256x128xf32>,
    return
  }
  func.func @transform_0(%arg0: i32) -> (i32, i32) {
    %c0_i32 = arith.constant 0 : i32
    %c0_i32_0 = arith.constant 0 : i32
    return %arg0, %c0_i32 : i32, i32
  }
  func.func @transform_1(%arg0: i32) -> (i32, i32, i32) {
    %c0_i32 = arith.constant 0 : i32
    %c0_i32_0 = arith.constant 0 : i32
    %c0_i32_1 = arith.constant 0 : i32
    %c0_i32_2 = arith.constant 0 : i32
    return %c0_i32, %c0_i32_0, %c0_i32_1 : i32, i32, i32
  }
  func.func @transform_2(%arg0: i32) -> (i32, i32, i32) {
    %c0_i32 = arith.constant 0 : i32
    %c0_i32_0 = arith.constant 0 : i32
    %c0_i32_1 = arith.constant 0 : i32
    %c0_i32_2 = arith.constant 0 : i32
    return %c0_i32, %c0_i32_0, %c0_i32_1 : i32, i32, i32
  }
  func.func @transform_3(%arg0: i32) -> (i32, i32) {
    %c0_i32 = arith.constant 0 : i32
    %c0_i32_0 = arith.constant 0 : i32
    return %arg0, %c0_i32 : i32, i32
  }
}

</mosaic_0001>

<bundles_post_ra>
// kernel: tpu_custom_call.1
= control target key start
LH: loop header
LB: loop body
LE: loop exit
PB: predicated region body
PF: predicated region fallthrough
CT: control target
= control target key end

     0   :  { %8 = vsyncpa [#allocation3], 0  ;;  %s2442_s0 = inlined_call_operand.hbm [shape: bf16[512,128], index: 0, kind: input, shape index: {}]   ;;  %s2443_s1 = inlined_call_operand.hbm [shape: bf16[5,128,128], index: 1, kind: input, shape index: {}]   ;;  %s2444_s2 = inlined_call_operand.hbm [shape: f32[5,1,128], index: 2, kind: input, shape index: {}]   ;;  %s2445_s3 = inlined_call_operand.hbm [shape: f32[512,128], index: 3, kind: output, shape index: {}]  }
   0x1   :  { %10 = vsyncpa [#allocation3 + $0x1], 0 }
   0x2   :  { %11 = vsyncpa [#allocation6], 0 }
   0x3   :  { %12 = vsyncpa [#allocation4], 0 }
   0x4   :  { %14 = vsyncpa [#allocation4 + $0x1], 0  ;;  %s2071_s12 = smov 0   ;;  %s2073_s13 = smov 0  }
   0x5   :  { %s2075_s14 = smov 0   ;;  %s2077_s15 = smov 0  }
   0x6 LB: > { %s2092_s16 = sadd.s32 4294967295, %s2041_s15   ;;  %s1479_s17 = sadd.s32 4294967294, %s2041_s15   ;;  %s2041_s15 = sphi %s2077_s15, %s2455_s15   ;;  %s2037_s14 = sphi %s2075_s14, %s2454_s14   ;;  %s2033_s13 = sphi %s2073_s13, %s2453_s13   ;;  %s2029_s12 = sphi %s2071_s12, %s2452_s12  }
   0x7   : > { %p40_p0 = scmp.ne.s32.totalorder %s2033_s13, %s2029_s12  ;;  %p41_p1 = scmp.eq.s32.totalorder %s2092_s16, 0 }
   0x8   : > { %p106_p2 = scmp.eq.s32.totalorder %s2092_s16, 1  ;;  %p112_p3 = scmp.eq.s32.totalorder %s1479_s17, 1 }
   0x9   : > { %p2101_p4 = por %p41_p1, %p40_p0  ;;  %p1480_p5 = scmp.ge.s32.totalorder %s2041_s15, 1 }
   0xa   : > { %p2106_p6 = por %p112_p3, %p40_p0  ;;  %p119_p7 = scmp.lt.s32.totalorder %s2041_s15, 3 }
   0xb   : > { %s130_s22 = sshll.u32 %s2443_s1, 4  ;;  %s2043_s24 = smov [#allocation5]   ;;  %s131_s22 = int_to_ptr.hbm [resolvable:$true] %s130_s22 }
   0xc   : > { %p2114_p8 = pnand %p1480_p5, %p119_p7  ;;  %s132_s25 = sshll.u32 %s2043_s24, 4  ;;  %s133_s25 = int_to_ptr.vmem [resolvable:$true] %s132_s25 }
   0xd   : > { %s144_s28 = sshll.u32 %s2444_s2, 4  ;;  %s2044_s29 = smov 64   ;;  %s145_s28 = int_to_ptr.hbm [resolvable:$true] %s144_s28 }
   0xe   : > { %p1815_p9 = pneg %p2114_p8  ;;  %s2045_s30 = smov 4  }
   0xf   : > { %s2046_s4 = smov [#allocation7]   ;;  %s2047_s6 = smov 16  }
  0x10   : > { %p1816_p10 = pnand %p1815_p9, %p41_p1  ;;  %s146_s5 = sshll.u32 %s2046_s4, 4  ;;  %s147_s5 = int_to_ptr.vmem [resolvable:$true] %s146_s5 }
  0x11   : > { %s2048_s7 = smov 1   ;;  %s2130_s8 = sadd.s32 1, %s2041_s15  }
  0x12   : > { %1818 = dma.hbm_to_vmem [thread:$0]  (!%p1816_p10), %s131_s22, 5120, %s133_s25, [#allocation6], %s2044_s29, %s2044_s29, %s2045_s30  }
  0x13   : > { %1821 = dma.hbm_to_vmem [thread:$0]  (!%p1816_p10), %s145_s28, 80, %s147_s5, [#allocation6], %s2047_s6, %s2047_s6, %s2048_s7  }
  0x14   : > { %s24_s9 = ssub.s32 %s2041_s15, %s2130_s8  ;;  %s27_s10 = sadd.s32 1, %s2037_s14 }
  0x15   : > { %p25_p12 = scmp.eq.s32.totalorder %s24_s9, 0  ;;  %p34_p13 = scmp.ne.s32.totalorder %s2037_s14, %s2033_s13 }
  0x16   : > { %p35_p0 = scmp.eq.s32.totalorder %s2041_s15, 0  ;;  %p1832_p7 = scmp.lt.s32.totalorder %s2041_s15, 2 }
  0x17   : > { %s2139_s11 = scalar_select %p25_p12, %s2037_s14, %s27_s10  }
  0x18   : > { %p36_p3 = por %p35_p0, %p34_p13  ;;  %p2143_p5 = por %p106_p2, %p34_p13 }
  0x19   : > { %s160_s20 = sand.u32 1, %s2037_s14   ;;  %s1721_s22 = sshll.u32 %s2041_s15, 7 }
  0x1a   : > { %s1484_s21 = sshll.u32 %s160_s20, 7  ;;  %s169_s26 = scalar_lea.hbm %s2442_s0, %s1721_s22 }
  0x1b   : > { %s164_s27 = scalar_lea.vmem [#allocation2], %s1484_s21  ;;  %s170_s4 = sshll.u32 %s169_s26, 4  ;;  %s171_s4 = int_to_ptr.hbm [resolvable:$true] %s170_s4 }
  0x1c   : > { %s172_s28 = sshll.u32 %s164_s27, 4  ;;  %p2153_p9 = pnand %p1832_p7, %p36_p3  ;;  %s173_s28 = int_to_ptr.vmem [resolvable:$true] %s172_s28 }
  0x1d   : > { %s161_s6 = scalar_lea.sflag [#allocation3], %s160_s20  ;;  %s1941_s7 = sshra.s32 %s171_s4, 4  ;;  %s1942_s7 = int_to_ptr.hbm [resolvable:$true] %s1941_s7 }
  0x1e   : > { %s1943_s9 = scalar_lea.hbm %s1942_s7, 128  ;;  %p1945_p10 = pneg %p2153_p9 }
  0x1f   : > { %p1944_p2 = scmp.ne.s32.totalorder %s1942_s7, %s1943_s9  ;;  %s1948_s22 = scalar_lea.hbm %s2442_s0, 256 }
  0x20   : > { %p1949_p0 = scmp.lt.s32.totalorder %s1942_s7, %s2442_s0  ;;  %p1950_p3 = scmp.lt.s32.totalorder %s1948_s22, %s1943_s9 }
  0x21   : > { %p1946_p12 = pnand %p1945_p10, %p1944_p2 }
  0x22   : > { %p1951_p7 = por %p1950_p3, %p1949_p0 }
  0x23   : > { %p1947_p13 = pneg %p1946_p12 }
  0x25   : > { %p1952_p11 = pnand %p1951_p7, %p1947_p13 }
  0x27   : > { %1955 = shalt.err (!%p1952_p11)
}
  0x28   : > { %1825 = dma.hbm_to_vmem [thread:$0]  (!%p2153_p9), %s171_s4, 2048, %s173_s28, %s161_s6, %s2044_s29, %s2044_s29, %s2045_s30  }
  0x29   : > { %184 = sbr.rel (%p2114_p8) target bundleno = 1033 (0x409), region = 32  ;;  %s2173_s20 = sand.u32 (!%p2114_p8), 1, %s2033_s13  }
  0x2a   : > { %s1488_s26 = sshll.u32 (!%p2114_p8), %s2173_s20, 7  ;;  %s187_s27 = scalar_lea.sflag (!%p2114_p8), [#allocation3], %s2173_s20 }
  0x2b   : > { %s2177_s7 = scalar_lea.vmem (!%p2114_p8), [#allocation2], %s1488_s26 }
  0x2e   : > { %2016 = dma.done.wait (%p2101_p4), %s187_s27, 2048  }
  0x2f   : > { %2018 = vsyncadd (%p2101_p4), %s187_s27, 4294965248 }
  0x30   : > { %2020 = dma.done.wait (%p41_p1), [#allocation6], 5200  }
  0x31   : > { %2022 = vsyncadd (%p41_p1), [#allocation6], 4294962096  ;;  %v1745_v0 = vld [vmem:[#allocation5 + $0x38] sm:$0xff]  ;;  %v1744_v1 = vld [vmem:[#allocation5 + $0x30] sm:$0xff]  ;;  %s1491_s18 = sshll.u32 %s2173_s20, 8  ;;  %s1778_s29 = sshll.u32 %s2092_s16, 8 }
  0x32   : > { %422 = vmatpush.bf16.msra.mxu0 %v1745_v0  ;;  %1779 = vmatpush.bf16.msra.mxu1 %v1745_v0  ;;  %v1743_v2 = vld [vmem:[#allocation5 + $0x28] sm:$0xff]  ;;  %v1742_v3 = vld [vmem:[#allocation5 + $0x20] sm:$0xff]  ;;  %v1741_v4 = vld [vmem:[#allocation5 + $0x18] sm:$0xff]  ;;  %s2329_s23 = scalar_lea.vmem [#allocation8], %s1491_s18  ;;  %s1383_s4 = scalar_lea.hbm %s2445_s3, %s1778_s29 }
  0x33   : > { %1780 = vmatpush.bf16.msra.mxu2 %v1745_v0  ;;  %1781 = vmatpush.bf16.msra.mxu3 %v1745_v0  ;;  %v1740_v5 = vld [vmem:[#allocation5 + $0x10] sm:$0xff]  ;;  %v1739_v6 = vld [vmem:[#allocation5 + $0x8] sm:$0xff]  ;;  %v1738_v7 = vld [vmem:[#allocation5] sm:$0xff]  ;;  %s1384_s5 = sshll.u32 %s2329_s23, 4  ;;  %s1386_s6 = sshll.u32 %s1383_s4, 4  ;;  %s1385_s5 = int_to_ptr.vmem [resolvable:$true] %s1384_s5  ;;  %s1387_s6 = int_to_ptr.hbm [resolvable:$true] %s1386_s6 }
  0x34   : > { %v1722_v8 = vld [vmem:[%s2177_s7] sm:$0xff]  ;;  %v1723_v9 = vld [vmem:[%s2177_s7 + $0x8] sm:$0xff]  ;;  %v1753_v11 = vld [vmem:[#allocation5 + $0x78] sm:$0xff]  ;;  %s1372_s9 = scalar_lea.sflag [#allocation4], %s2173_s20  ;;  %s1985_s10 = sshra.s32 %s1387_s6, 4  ;;  %s1986_s10 = int_to_ptr.hbm [resolvable:$true] %s1985_s10 }
  0x35   : > { %v1726_v10 = vld [vmem:[%s2177_s7 + $0x20] sm:$0xff]  ;;  %v1752_v12 = vld [vmem:[#allocation5 + $0x70] sm:$0xff]  ;;  %v1751_v13 = vld [vmem:[#allocation5 + $0x68] sm:$0xff]  ;;  %s1987_s16 = scalar_lea.hbm %s1986_s10, 256  ;;  %s1991_s24 = scalar_lea.hbm %s2445_s3, 512 }
  0x36   : > { %423 = vmatpush.bf16.msra.mxu0 %v1744_v1  ;;  %1782 = vmatpush.bf16.msra.mxu1 %v1744_v1  ;;  %v1750_v14 = vld [vmem:[#allocation5 + $0x60] sm:$0xff]  ;;  %v1724_v15 = vld [vmem:[%s2177_s7 + $0x10] sm:$0xff]  ;;  %v1727_v16 = vld [vmem:[%s2177_s7 + $0x28] sm:$0xff]  ;;  %p1988_p1 = scmp.ne.s32.totalorder %s1986_s10, %s1987_s16  ;;  %p1992_p11 = scmp.lt.s32.totalorder %s1986_s10, %s2445_s3 }
  0x37   : > { %1783 = vmatpush.bf16.msra.mxu2 %v1744_v1  ;;  %1784 = vmatpush.bf16.msra.mxu3 %v1744_v1  ;;  %v1749_v17 = vld [vmem:[#allocation5 + $0x58] sm:$0xff]  ;;  %v1730_v18 = vld [vmem:[%s2177_s7 + $0x40] sm:$0xff]  ;;  %v1748_v19 = vld [vmem:[#allocation5 + $0x50] sm:$0xff]  ;;  %p1993_p9 = scmp.lt.s32.totalorder %s1991_s24, %s1987_s16 }
  0x38   : > { %v1747_v20 = vld [vmem:[#allocation5 + $0x48] sm:$0xff]  ;;  %v1725_v21 = vld [vmem:[%s2177_s7 + $0x18] sm:$0xff]  ;;  %v1728_v22 = vld [vmem:[%s2177_s7 + $0x30] sm:$0xff]  ;;  %p1989_p4 = pnand %p1988_p1, %p2143_p5 }
  0x39   : > { %v1729_v23 = vld [vmem:[%s2177_s7 + $0x38] sm:$0xff]  ;;  %v1731_v24 = vld [vmem:[%s2177_s7 + $0x48] sm:$0xff]  ;;  %v1746_v25 = vld [vmem:[#allocation5 + $0x40] sm:$0xff]  ;;  %p1994_p2 = por %p1993_p9, %p1992_p11 }
  0x3a   : > { %424 = vmatpush.bf16.msra.mxu0 %v1743_v2  ;;  %1785 = vmatpush.bf16.msra.mxu1 %v1743_v2  ;;  %v1732_v26 = vld [vmem:[%s2177_s7 + $0x50] sm:$0xff]  ;;  %v2198_v28 = vld [vmem:[#allocation7] ss:$0 sm:$0xff]  ;;  %v1733_v29 = vld [vmem:[%s2177_s7 + $0x58] sm:$0xff]  ;;  %p1990_p8 = pneg %p1989_p4 }
  0x3b   : > { %1786 = vmatpush.bf16.msra.mxu2 %v1743_v2  ;;  %1787 = vmatpush.bf16.msra.mxu3 %v1743_v2  ;;  %v1734_v37 = vld [vmem:[%s2177_s7 + $0x60] sm:$0xff]  ;;  %v1735_v45 = vld [vmem:[%s2177_s7 + $0x68] sm:$0xff]  ;;  %v1761_v53 = vld [vmem:[#allocation5 + $0xb8] sm:$0xff] }
  0x3c   : > { %v1736_v55 = vld [vmem:[%s2177_s7 + $0x70] sm:$0xff]  ;;  %v1737_v1 = vld [vmem:[%s2177_s7 + $0x78] sm:$0xff]  ;;  %v1759_v2 = vld [vmem:[#allocation5 + $0xa8] sm:$0xff]  ;;  %p1995_p10 = pnand %p1994_p2, %p1990_p8 }
  0x3d   : > { %v1760_v63 = vld [vmem:[#allocation5 + $0xb0] sm:$0xff] }
  0x3e   : > { %425 = vmatpush.bf16.msra.mxu0 %v1742_v3  ;;  %1788 = vmatpush.bf16.msra.mxu1 %v1742_v3 }
  0x3f   : > { %1789 = vmatpush.bf16.msra.mxu2 %v1742_v3  ;;  %1790 = vmatpush.bf16.msra.mxu3 %v1742_v3 }
  0x42   : > { %426 = vmatpush.bf16.msra.mxu0 %v1741_v4  ;;  %1791 = vmatpush.bf16.msra.mxu1 %v1741_v4 }
  0x43   : > { %1792 = vmatpush.bf16.msra.mxu2 %v1741_v4  ;;  %1793 = vmatpush.bf16.msra.mxu3 %v1741_v4 }
  0x46   : > { %427 = vmatpush.bf16.msra.mxu0 %v1740_v5  ;;  %1794 = vmatpush.bf16.msra.mxu1 %v1740_v5 }
  0x47   : > { %1795 = vmatpush.bf16.msra.mxu2 %v1740_v5  ;;  %1796 = vmatpush.bf16.msra.mxu3 %v1740_v5 }
  0x4a   : > { %428 = vmatpush.bf16.msra.mxu0 %v1739_v6  ;;  %1797 = vmatpush.bf16.msra.mxu1 %v1739_v6 }
  0x4b   : > { %1798 = vmatpush.bf16.msra.mxu2 %v1739_v6  ;;  %1799 = vmatpush.bf16.msra.mxu3 %v1739_v6 }
  0x4e   : > { %429 = vmatpush.bf16.msra.mxu0 %v1738_v7  ;;  %1800 = vmatpush.bf16.msra.mxu1 %v1738_v7 }
  0x4f   : > { %1801 = vmatpush.bf16.msra.mxu2 %v1738_v7  ;;  %1802 = vmatpush.bf16.msra.mxu3 %v1738_v7 }
  0x51   : > { %430 = vmatmul.bf16.vlgmr.msra.gmra.mxu0 %v1722_v8  ;;  %450 = vmatmul.bf16.vlgmr.msra.gmra.mxu1 %v1726_v10  ;;  %v1757_v10 = vld [vmem:[#allocation5 + $0x98] sm:$0xff] }
  0x52   : > { %629 = vmatpush.bf16.msrb.mxu1 %v1753_v11  ;;  %470 = vmatmul.bf16.vlgmr.msra.gmra.mxu2 %v1730_v18  ;;  %v1756_v18 = vld [vmem:[#allocation5 + $0x90] sm:$0xff] }
  0x53   : > { %490 = vmatmul.bf16.vlgmr.msra.gmra.mxu3 %v1734_v37  ;;  %836 = vmatpush.bf16.msrb.mxu2 %v1761_v53 }
  0x56   : > { %630 = vmatpush.bf16.msrb.mxu1 %v1752_v12 }
  0x57   : > { %837 = vmatpush.bf16.msrb.mxu2 %v1760_v63 }
  0x5a   : > { %631 = vmatpush.bf16.msrb.mxu1 %v1751_v13 }
  0x5b   : > { %838 = vmatpush.bf16.msrb.mxu2 %v1759_v2 }
  0x5e   : > { %632 = vmatpush.bf16.msrb.mxu1 %v1750_v14 }
  0x61   : > { %435 = vmatmul.bf16.gmra.mxu0 %v1723_v9  ;;  %455 = vmatmul.bf16.gmra.mxu1 %v1727_v16  ;;  %v1758_v9 = vld [vmem:[#allocation5 + $0xa0] sm:$0xff] }
  0x62   : > { %633 = vmatpush.bf16.msrb.mxu1 %v1749_v17  ;;  %475 = vmatmul.bf16.gmra.mxu2 %v1731_v24 }
  0x63   : > { %495 = vmatmul.bf16.gmra.mxu3 %v1735_v45  ;;  %839 = vmatpush.bf16.msrb.mxu2 %v1758_v9 }
  0x66   : > { %634 = vmatpush.bf16.msrb.mxu1 %v1748_v19  ;;  %v1755_v19 = vld [vmem:[#allocation5 + $0x88] sm:$0xff] }
  0x67   : > { %840 = vmatpush.bf16.msrb.mxu2 %v1757_v10 }
  0x6a   : > { %635 = vmatpush.bf16.msrb.mxu1 %v1747_v20 }
  0x6b   : > { %841 = vmatpush.bf16.msrb.mxu2 %v1756_v18 }
  0x6e   : > { %636 = vmatpush.bf16.msrb.mxu1 %v1746_v25 }
  0x6f   : > { %842 = vmatpush.bf16.msrb.mxu2 %v1755_v19 }
  0x71   : > { %440 = vmatmul.bf16.gmra.mxu0 %v1724_v15  ;;  %460 = vmatmul.bf16.gmra.mxu1 %v1728_v22 }
  0x72   : > { %480 = vmatmul.bf16.gmra.mxu2 %v1732_v26 }
  0x73   : > { %500 = vmatmul.bf16.gmra.mxu3 %v1736_v55 }
  0x81   : > { %445 = vmatmul.bf16.gmra.mxu0 %v1725_v21  ;;  %465 = vmatmul.bf16.gmra.mxu1 %v1729_v23 }
  0x82   : > { %485 = vmatmul.bf16.gmra.mxu2 %v1733_v29 }
  0x83   : > { %505 = vmatmul.bf16.gmra.mxu3 %v1737_v1 }
  0xce   : > { %v431_v27 = vpop.f32.mrf.mxu0  ;;  %v451_v51 = vpop.f32.mrf.mxu1 }
  0xcf   : > { %v432_v30 = vadd.f32 %v2198_v28, %v431_v27  ;;  %v452_v3 = vadd.f32 %v2198_v28, %v451_v51  ;;  %v1754_v27 = vld [vmem:[#allocation5 + $0x80] sm:$0xff] }
  0xd0   : > { %843 = vmatpush.bf16.msrb.mxu2 %v1754_v27 }
  0xd1   : > { %v511_v33 = vmax.f32 %v432_v30, 0.0  ;;  %v519_v5 = vmax.f32 %v452_v3, 0.0 }
  0xd5   : > { %v471_v25 = vpop.f32.mrf.mxu2 }
  0xd6   : > { %v433_v31 = vpop.f32.mrf.mxu0  ;;  %v453_v56 = vpop.f32.mrf.mxu1  ;;  %v472_v37 = vadd.f32 %v2198_v28, %v471_v25 }
  0xd7   : > { %v434_v32 = vadd.f32 %v2198_v28, %v433_v31  ;;  %v454_v4 = vadd.f32 %v2198_v28, %v453_v56 }
  0xd9   : > { %v512_v34 = vmax.f32 %v434_v32, 0.0  ;;  %v520_v6 = vmax.f32 %v454_v4, 0.0 }
  0xdb   : > { %v543_v35 = vpack.c.bf16 %v512_v34, %v511_v33  ;;  %v547_v8 = vpack.c.bf16 %v520_v6, %v519_v5 }
  0xdd   : > { %637 = vmatmul.bf16.vlgmr.msrb.gmra.mxu1 %v543_v35  ;;  %v473_v32 = vpop.f32.mrf.mxu2 }
  0xde   : > { %v436_v36 = vpop.f32.mrf.mxu0  ;;  %v456_v0 = vpop.f32.mrf.mxu1 }
  0xdf   : > { %v437_v38 = vadd.f32 %v2198_v28, %v436_v36  ;;  %v457_v12 = vadd.f32 %v2198_v28, %v456_v0 }
  0xe1   : > { %v513_v41 = vmax.f32 %v437_v38, 0.0  ;;  %v521_v14 = vmax.f32 %v457_v12, 0.0  ;;  %v474_v38 = vadd.f32 %v2198_v28, %v473_v32 }
  0xe5   : > { %v476_v36 = vpop.f32.mrf.mxu2 }
  0xe6   : > { %v438_v39 = vpop.f32.mrf.mxu0  ;;  %v458_v7 = vpop.f32.mrf.mxu1 }
  0xe7   : > { %v439_v40 = vadd.f32 %v2198_v28, %v438_v39  ;;  %v459_v13 = vadd.f32 %v2198_v28, %v458_v7  ;;  %v527_v39 = vmax.f32 %v472_v37, 0.0  ;;  %v491_v7 = vpop.f32.mrf.mxu3 }
  0xe9   : > { %v514_v42 = vmax.f32 %v439_v40, 0.0  ;;  %v522_v15 = vmax.f32 %v459_v13, 0.0  ;;  %v528_v40 = vmax.f32 %v474_v38, 0.0  ;;  %v1769_v38 = vld [vmem:[#allocation5 + $0xf8] sm:$0xff] }
  0xea   : > { %1043 = vmatpush.bf16.msrb.mxu3 %v1769_v38  ;;  %v2257_v38 = vld [vmem:[#allocation7 + $0x2] ss:$0 sm:$0xff] }
  0xeb   : > { %v544_v43 = vpack.c.bf16 %v514_v42, %v513_v41  ;;  %v548_v16 = vpack.c.bf16 %v522_v15, %v521_v14 }
  0xed   : > { %642 = vmatmul.bf16.gmra.mxu1 %v544_v43  ;;  %v478_v41 = vpop.f32.mrf.mxu2  ;;  %v551_v43 = vpack.c.bf16 %v528_v40, %v527_v39 }
  0xee   : > { %v441_v44 = vpop.f32.mrf.mxu0  ;;  %v461_v11 = vpop.f32.mrf.mxu1 }
  0xef   : > { %v442_v46 = vadd.f32 %v2198_v28, %v441_v44  ;;  %v462_v20 = vadd.f32 %v2198_v28, %v461_v11  ;;  %v2223_v44 = vld [vmem:[#allocation7 + $0x1] ss:$0 sm:$0xff]  ;;  %v493_v15 = vpop.f32.mrf.mxu3 }
  0xf0   : > { %v494_v27 = vadd.f32 %v2198_v28, %v493_v15 }
  0xf1   : > { %v515_v49 = vmax.f32 %v442_v46, 0.0  ;;  %v523_v23 = vmax.f32 %v462_v20, 0.0 }
  0xf6   : > { %v443_v47 = vpop.f32.mrf.mxu0  ;;  %v463_v17 = vpop.f32.mrf.mxu1 }
  0xf7   : > { %v444_v48 = vadd.f32 %v2198_v28, %v443_v47  ;;  %v464_v21 = vadd.f32 %v2198_v28, %v463_v17  ;;  %v481_v47 = vpop.f32.mrf.mxu2 }
  0xf9   : > { %v516_v50 = vmax.f32 %v444_v48, 0.0  ;;  %v524_v24 = vmax.f32 %v464_v21, 0.0  ;;  %v477_v48 = vadd.f32 %v2198_v28, %v476_v36 }
  0xfb   : > { %v545_v52 = vpack.c.bf16 %v516_v50, %v515_v49  ;;  %v549_v26 = vpack.c.bf16 %v524_v24, %v523_v23  ;;  %v479_v49 = vadd.f32 %v2198_v28, %v478_v41  ;;  %v529_v53 = vmax.f32 %v477_v48, 0.0  ;;  %v496_v23 = vpop.f32.mrf.mxu3  ;;  %v1768_v48 = vld [vmem:[#allocation5 + $0xf0] sm:$0xff] }
  0xfc   : > { %1044 = vmatpush.bf16.msrb.mxu3 %v1768_v48 }
  0xfd   : > { %647 = vmatmul.bf16.gmra.mxu1 %v545_v52 }
  0xfe   : > { %v446_v54 = vpop.f32.mrf.mxu0  ;;  %v466_v22 = vpop.f32.mrf.mxu1 }
  0xff   : > { %v447_v57 = vadd.f32 %v2198_v28, %v446_v54  ;;  %v467_v30 = vadd.f32 %v2198_v28, %v466_v22  ;;  %v530_v54 = vmax.f32 %v479_v49, 0.0 }
 0x101   : > { %v517_v60 = vmax.f32 %v447_v57, 0.0  ;;  %v525_v33 = vmax.f32 %v467_v30, 0.0  ;;  %v552_v57 = vpack.c.bf16 %v530_v54, %v529_v53 }
 0x106   : > { %v448_v58 = vpop.f32.mrf.mxu0  ;;  %v468_v29 = vpop.f32.mrf.mxu1 }
 0x107   : > { %v449_v59 = vadd.f32 %v2198_v28, %v448_v58  ;;  %v469_v31 = vadd.f32 %v2198_v28, %v468_v29  ;;  %v483_v58 = vpop.f32.mrf.mxu2 }
 0x109   : > { %v518_v61 = vmax.f32 %v449_v59, 0.0  ;;  %v526_v34 = vmax.f32 %v469_v31, 0.0 }
 0x10b   : > { %v546_v62 = vpack.c.bf16 %v518_v61, %v517_v60  ;;  %v550_v35 = vpack.c.bf16 %v526_v34, %v525_v33  ;;  %v482_v61 = vadd.f32 %v2198_v28, %v481_v47  ;;  %v536_v33 = vmax.f32 %v494_v27, 0.0 }
 0x10d   : > { %652 = vmatmul.bf16.gmra.mxu1 %v546_v62  ;;  %v484_v62 = vadd.f32 %v2198_v28, %v483_v58  ;;  %v531_v3 = vmax.f32 %v482_v61, 0.0 }
 0x10f   : > { %v486_v2 = vpop.f32.mrf.mxu2  ;;  %v532_v4 = vmax.f32 %v484_v62, 0.0 }
 0x110   : > { %v487_v12 = vadd.f32 %v2198_v28, %v486_v2 }
 0x112   : > { %v533_v18 = vmax.f32 %v487_v12, 0.0 }
 0x117   : > { %v488_v9 = vpop.f32.mrf.mxu2 }
 0x118   : > { %v489_v13 = vadd.f32 %v2198_v28, %v488_v9 }
 0x11a   : > { %v534_v19 = vmax.f32 %v489_v13, 0.0 }
 0x11c   : > { %v554_v22 = vpack.c.bf16 %v534_v19, %v533_v18  ;;  %v1764_v18 = vld [vmem:[#allocation5 + $0xd0] sm:$0xff] }
 0x11d   : > { %657 = vmatmul.bf16.gmra.mxu1 %v547_v8  ;;  %v553_v8 = vpack.c.bf16 %v532_v4, %v531_v3 }
 0x12d   : > { %662 = vmatmul.bf16.gmra.mxu1 %v548_v16 }
 0x13d   : > { %667 = vmatmul.bf16.gmra.mxu1 %v549_v26  ;;  %v492_v26 = vadd.f32 %v2198_v28, %v491_v7 }
 0x13f   : > { %v535_v32 = vmax.f32 %v492_v26, 0.0  ;;  %v1762_v26 = vld [vmem:[#allocation5 + $0xc0] sm:$0xff] }
 0x141   : > { %v555_v37 = vpack.c.bf16 %v536_v33, %v535_v32 }
 0x14d   : > { %672 = vmatmul.bf16.gmra.mxu1 %v550_v35  ;;  %v498_v35 = vpop.f32.mrf.mxu3 }
 0x155   : > { %v501_v41 = vpop.f32.mrf.mxu3 }
 0x156   : > { %v502_v58 = vadd.f32 %v2198_v28, %v501_v41 }
 0x15a   : > { %v638_v42 = vpop.f32.mrf.mxu1 }
 0x15b   : > { %v639_v45 = vadd.f32 %v2223_v44, %v638_v42  ;;  %v497_v42 = vadd.f32 %v2198_v28, %v496_v23 }
 0x15d   : > { %677 = vmatmul.bf16.gmra.mxu1 %v551_v43  ;;  %v718_v51 = vmax.f32 %v639_v45, 0.0  ;;  %v499_v43 = vadd.f32 %v2198_v28, %v498_v35  ;;  %v537_v49 = vmax.f32 %v497_v42, 0.0  ;;  %v503_v54 = vpop.f32.mrf.mxu3 }
 0x162   : > { %v640_v46 = vpop.f32.mrf.mxu1 }
 0x163   : > { %v641_v50 = vadd.f32 %v2223_v44, %v640_v46 }
 0x165   : > { %v719_v52 = vmax.f32 %v641_v50, 0.0  ;;  %v538_v50 = vmax.f32 %v499_v43, 0.0 }
 0x167   : > { %v750_v55 = vpack.c.bf16 %v719_v52, %v718_v51  ;;  %v556_v53 = vpack.c.bf16 %v538_v50, %v537_v49 }
 0x169   : > { %844 = vmatmul.bf16.vlgmr.msrb.gmra.mxu2 %v750_v55  ;;  %v1767_v55 = vld [vmem:[#allocation5 + $0xe8] sm:$0xff] }
 0x16a   : > { %v643_v56 = vpop.f32.mrf.mxu1  ;;  %1045 = vmatpush.bf16.msrb.mxu3 %v1767_v55 }
 0x16b   : > { %v644_v59 = vadd.f32 %v2223_v44, %v643_v56 }
 0x16d   : > { %682 = vmatmul.bf16.gmra.mxu1 %v552_v57  ;;  %v720_v0 = vmax.f32 %v644_v59, 0.0  ;;  %v504_v59 = vadd.f32 %v2198_v28, %v503_v54 }
 0x16f   : > { %v540_v2 = vmax.f32 %v504_v59, 0.0 }
 0x172   : > { %v645_v60 = vpop.f32.mrf.mxu1 }
 0x173   : > { %v646_v63 = vadd.f32 %v2223_v44, %v645_v60 }
 0x175   : > { %v721_v1 = vmax.f32 %v646_v63, 0.0  ;;  %v1766_v63 = vld [vmem:[#allocation5 + $0xe0] sm:$0xff] }
 0x176   : > { %1046 = vmatpush.bf16.msrb.mxu3 %v1766_v63 }
 0x177   : > { %v751_v5 = vpack.c.bf16 %v721_v1, %v720_v0  ;;  %v506_v0 = vpop.f32.mrf.mxu3  ;;  %v539_v1 = vmax.f32 %v502_v58, 0.0 }
 0x179   : > { %849 = vmatmul.bf16.gmra.mxu2 %v751_v5  ;;  %v557_v5 = vpack.c.bf16 %v540_v2, %v539_v1 }
 0x17a   : > { %v648_v6 = vpop.f32.mrf.mxu1 }
 0x17b   : > { %v649_v10 = vadd.f32 %v2223_v44, %v648_v6  ;;  %v1765_v6 = vld [vmem:[#allocation5 + $0xd8] sm:$0xff] }
 0x17c   : > { %1047 = vmatpush.bf16.msrb.mxu3 %v1765_v6 }
 0x17d   : > { %687 = vmatmul.bf16.gmra.mxu1 %v553_v8  ;;  %v722_v16 = vmax.f32 %v649_v10, 0.0  ;;  %v507_v10 = vadd.f32 %v2198_v28, %v506_v0 }
 0x17f   : > { %v508_v7 = vpop.f32.mrf.mxu3  ;;  %v541_v15 = vmax.f32 %v507_v10, 0.0 }
 0x180   : > { %1048 = vmatpush.bf16.msrb.mxu3 %v1764_v18 }
 0x182   : > { %v650_v11 = vpop.f32.mrf.mxu1 }
 0x183   : > { %v651_v14 = vadd.f32 %v2223_v44, %v650_v11  ;;  %v509_v11 = vadd.f32 %v2198_v28, %v508_v7 }
 0x185   : > { %v723_v17 = vmax.f32 %v651_v14, 0.0 }
 0x187   : > { %v752_v20 = vpack.c.bf16 %v723_v17, %v722_v16  ;;  %v542_v16 = vmax.f32 %v509_v11, 0.0 }
 0x189   : > { %854 = vmatmul.bf16.gmra.mxu2 %v752_v20  ;;  %v558_v20 = vpack.c.bf16 %v542_v16, %v541_v15 }
 0x18a   : > { %v653_v21 = vpop.f32.mrf.mxu1 }
 0x18b   : > { %v654_v24 = vadd.f32 %v2223_v44, %v653_v21  ;;  %v1763_v21 = vld [vmem:[#allocation5 + $0xc8] sm:$0xff] }
 0x18c   : > { %1049 = vmatpush.bf16.msrb.mxu3 %v1763_v21 }
 0x18d   : > { %692 = vmatmul.bf16.gmra.mxu1 %v554_v22  ;;  %v724_v30 = vmax.f32 %v654_v24, 0.0 }
 0x190   : > { %1050 = vmatpush.bf16.msrb.mxu3 %v1762_v26 }
 0x192   : > { %v655_v25 = vpop.f32.mrf.mxu1 }
 0x193   : > { %v656_v29 = vadd.f32 %v2223_v44, %v655_v25 }
 0x195   : > { %v725_v31 = vmax.f32 %v656_v29, 0.0 }
 0x197   : > { %v753_v34 = vpack.c.bf16 %v725_v31, %v724_v30 }
 0x199   : > { %859 = vmatmul.bf16.gmra.mxu2 %v753_v34 }
 0x19a   : > { %v658_v36 = vpop.f32.mrf.mxu1 }
 0x19b   : > { %v659_v39 = vadd.f32 %v2223_v44, %v658_v36 }
 0x19d   : > { %697 = vmatmul.bf16.gmra.mxu1 %v555_v37  ;;  %v726_v46 = vmax.f32 %v659_v39, 0.0 }
 0x1a2   : > { %v660_v40 = vpop.f32.mrf.mxu1 }
 0x1a3   : > { %v661_v45 = vadd.f32 %v2223_v44, %v660_v40 }
 0x1a5   : > { %v727_v47 = vmax.f32 %v661_v45, 0.0 }
 0x1a7   : > { %v754_v51 = vpack.c.bf16 %v727_v47, %v726_v46 }
 0x1a9   : > { %864 = vmatmul.bf16.gmra.mxu2 %v754_v51 }
 0x1aa   : > { %v663_v52 = vpop.f32.mrf.mxu1 }
 0x1ab   : > { %v664_v56 = vadd.f32 %v2223_v44, %v663_v52 }
 0x1ad   : > { %702 = vmatmul.bf16.gmra.mxu1 %v556_v53  ;;  %v728_v61 = vmax.f32 %v664_v56, 0.0 }
 0x1b2   : > { %v665_v57 = vpop.f32.mrf.mxu1 }
 0x1b3   : > { %v666_v60 = vadd.f32 %v2223_v44, %v665_v57 }
 0x1b5   : > { %v729_v62 = vmax.f32 %v666_v60, 0.0 }
 0x1b7   : > { %v755_v3 = vpack.c.bf16 %v729_v62, %v728_v61 }
 0x1b9   : > { %869 = vmatmul.bf16.gmra.mxu2 %v755_v3 }
 0x1ba   : > { %v668_v4 = vpop.f32.mrf.mxu1 }
 0x1bb   : > { %v669_v8 = vadd.f32 %v2223_v44, %v668_v4 }
 0x1bd   : > { %707 = vmatmul.bf16.gmra.mxu1 %v557_v5  ;;  %v730_v13 = vmax.f32 %v669_v8, 0.0 }
 0x1c2   : > { %v670_v9 = vpop.f32.mrf.mxu1 }
 0x1c3   : > { %v671_v12 = vadd.f32 %v2223_v44, %v670_v9 }
 0x1c5   : > { %v731_v14 = vmax.f32 %v671_v12, 0.0 }
 0x1c7   : > { %v756_v17 = vpack.c.bf16 %v731_v14, %v730_v13 }
 0x1c9   : > { %874 = vmatmul.bf16.gmra.mxu2 %v756_v17 }
 0x1ca   : > { %v673_v19 = vpop.f32.mrf.mxu1 }
 0x1cb   : > { %v674_v22 = vadd.f32 %v2223_v44, %v673_v19 }
 0x1cd   : > { %712 = vmatmul.bf16.gmra.mxu1 %v558_v20  ;;  %v732_v24 = vmax.f32 %v674_v22, 0.0 }
 0x1d2   : > { %v675_v23 = vpop.f32.mrf.mxu1 }
 0x1d3   : > { %v676_v28 = vadd.f32 %v2223_v44, %v675_v23 }
 0x1d5   : > { %v733_v25 = vmax.f32 %v676_v28, 0.0 }
 0x1d7   : > { %v757_v27 = vpack.c.bf16 %v733_v25, %v732_v24 }
 0x1d9   : > { %879 = vmatmul.bf16.gmra.mxu2 %v757_v27 }
 0x1da   : > { %v678_v29 = vpop.f32.mrf.mxu1 }
 0x1db   : > { %v679_v30 = vadd.f32 %v2223_v44, %v678_v29 }
 0x1dd   : > { %v734_v33 = vmax.f32 %v679_v30, 0.0 }
 0x1e2   : > { %v680_v31 = vpop.f32.mrf.mxu1 }
 0x1e3   : > { %v681_v32 = vadd.f32 %v2223_v44, %v680_v31 }
 0x1e5   : > { %v735_v34 = vmax.f32 %v681_v32, 0.0  ;;  %v1777_v32 = vld [vmem:[#allocation5 + $0x138] sm:$0xff] }
 0x1e6   : > { %1250 = vmatpush.bf16.msrb.mxu0 %v1777_v32 }
 0x1e7   : > { %v758_v35 = vpack.c.bf16 %v735_v34, %v734_v33 }
 0x1e9   : > { %884 = vmatmul.bf16.gmra.mxu2 %v758_v35 }
 0x1ea   : > { %v683_v36 = vpop.f32.mrf.mxu1 }
 0x1eb   : > { %v684_v39 = vadd.f32 %v2223_v44, %v683_v36 }
 0x1ec   : > { %v845_v37 = vpop.f32.mrf.mxu2 }
 0x1ed   : > { %v846_v41 = vadd.f32 %v2257_v38, %v845_v37  ;;  %v736_v45 = vmax.f32 %v684_v39, 0.0 }
 0x1ef   : > { %v925_v48 = vmax.f32 %v846_v41, 0.0 }
 0x1f2   : > { %v685_v40 = vpop.f32.mrf.mxu1 }
 0x1f3   : > { %v686_v42 = vadd.f32 %v2223_v44, %v685_v40 }
 0x1f4   : > { %v847_v43 = vpop.f32.mrf.mxu2 }
 0x1f5   : > { %v737_v46 = vmax.f32 %v686_v42, 0.0  ;;  %v848_v47 = vadd.f32 %v2257_v38, %v847_v43 }
 0x1f7   : > { %v759_v49 = vpack.c.bf16 %v737_v46, %v736_v45  ;;  %v926_v50 = vmax.f32 %v848_v47, 0.0  ;;  %v1776_v46 = vld [vmem:[#allocation5 + $0x130] sm:$0xff] }
 0x1f8   : > { %1251 = vmatpush.bf16.msrb.mxu0 %v1776_v46 }
 0x1f9   : > { %889 = vmatmul.bf16.gmra.mxu2 %v759_v49  ;;  %v957_v51 = vpack.c.bf16 %v926_v50, %v925_v48  ;;  %v1775_v50 = vld [vmem:[#allocation5 + $0x128] sm:$0xff] }
 0x1fa   : > { %v688_v52 = vpop.f32.mrf.mxu1 }
 0x1fb   : > { %1051 = vmatmul.bf16.vlgmr.msrb.gmra.mxu3 %v957_v51  ;;  %v689_v54 = vadd.f32 %v2223_v44, %v688_v52 }
 0x1fc   : > { %v850_v53 = vpop.f32.mrf.mxu2  ;;  %1252 = vmatpush.bf16.msrb.mxu0 %v1775_v50 }
 0x1fd   : > { %v851_v56 = vadd.f32 %v2257_v38, %v850_v53  ;;  %v738_v59 = vmax.f32 %v689_v54, 0.0 }
 0x1ff   : > { %v927_v62 = vmax.f32 %v851_v56, 0.0 }
 0x202   : > { %v690_v55 = vpop.f32.mrf.mxu1 }
 0x203   : > { %v691_v57 = vadd.f32 %v2223_v44, %v690_v55 }
 0x204   : > { %v852_v58 = vpop.f32.mrf.mxu2 }
 0x205   : > { %v739_v60 = vmax.f32 %v691_v57, 0.0  ;;  %v853_v61 = vadd.f32 %v2257_v38, %v852_v58 }
 0x207   : > { %v760_v63 = vpack.c.bf16 %v739_v60, %v738_v59  ;;  %v928_v0 = vmax.f32 %v853_v61, 0.0 }
 0x209   : > { %894 = vmatmul.bf16.gmra.mxu2 %v760_v63  ;;  %v958_v1 = vpack.c.bf16 %v928_v0, %v927_v62  ;;  %v1774_v62 = vld [vmem:[#allocation5 + $0x120] sm:$0xff] }
 0x20a   : > { %v693_v2 = vpop.f32.mrf.mxu1  ;;  %1253 = vmatpush.bf16.msrb.mxu0 %v1774_v62 }
 0x20b   : > { %1056 = vmatmul.bf16.gmra.mxu3 %v958_v1  ;;  %v694_v4 = vadd.f32 %v2223_v44, %v693_v2  ;;  %v1773_v2 = vld [vmem:[#allocation5 + $0x118] sm:$0xff] }
 0x20c   : > { %v855_v3 = vpop.f32.mrf.mxu2 }
 0x20d   : > { %v856_v6 = vadd.f32 %v2257_v38, %v855_v3  ;;  %v740_v9 = vmax.f32 %v694_v4, 0.0 }
 0x20e   : > { %1254 = vmatpush.bf16.msrb.mxu0 %v1773_v2 }
 0x20f   : > { %v929_v12 = vmax.f32 %v856_v6, 0.0 }
 0x212   : > { %v695_v5 = vpop.f32.mrf.mxu1 }
 0x213   : > { %v696_v7 = vadd.f32 %v2223_v44, %v695_v5 }
 0x214   : > { %v857_v8 = vpop.f32.mrf.mxu2 }
 0x215   : > { %v741_v10 = vmax.f32 %v696_v7, 0.0  ;;  %v858_v11 = vadd.f32 %v2257_v38, %v857_v8 }
 0x217   : > { %v761_v13 = vpack.c.bf16 %v741_v10, %v740_v9  ;;  %v930_v14 = vmax.f32 %v858_v11, 0.0 }
 0x219   : > { %899 = vmatmul.bf16.gmra.mxu2 %v761_v13  ;;  %v959_v15 = vpack.c.bf16 %v930_v14, %v929_v12 }
 0x21a   : > { %v698_v16 = vpop.f32.mrf.mxu1 }
 0x21b   : > { %1061 = vmatmul.bf16.gmra.mxu3 %v959_v15  ;;  %v699_v18 = vadd.f32 %v2223_v44, %v698_v16  ;;  %v1772_v15 = vld [vmem:[#allocation5 + $0x110] sm:$0xff] }
 0x21c   : > { %v860_v17 = vpop.f32.mrf.mxu2  ;;  %1255 = vmatpush.bf16.msrb.mxu0 %v1772_v15 }
 0x21d   : > { %v861_v20 = vadd.f32 %v2257_v38, %v860_v17  ;;  %v742_v23 = vmax.f32 %v699_v18, 0.0  ;;  %v1771_v17 = vld [vmem:[#allocation5 + $0x108] sm:$0xff] }
 0x21f   : > { %v931_v25 = vmax.f32 %v861_v20, 0.0 }
 0x220   : > { %1256 = vmatpush.bf16.msrb.mxu0 %v1771_v17 }
 0x222   : > { %v700_v19 = vpop.f32.mrf.mxu1 }
 0x223   : > { %v701_v21 = vadd.f32 %v2223_v44, %v700_v19 }
 0x224   : > { %v862_v22 = vpop.f32.mrf.mxu2 }
 0x225   : > { %v743_v28 = vmax.f32 %v701_v21, 0.0  ;;  %v863_v24 = vadd.f32 %v2257_v38, %v862_v22  ;;  %v1770_v22 = vld [vmem:[#allocation5 + $0x100] sm:$0xff] }
 0x226   : > { %1257 = vmatpush.bf16.msrb.mxu0 %v1770_v22 }
 0x227   : > { %v762_v26 = vpack.c.bf16 %v743_v28, %v742_v23  ;;  %v932_v27 = vmax.f32 %v863_v24, 0.0 }
 0x229   : > { %904 = vmatmul.bf16.gmra.mxu2 %v762_v26  ;;  %v960_v29 = vpack.c.bf16 %v932_v27, %v931_v25 }
 0x22a   : > { %v703_v30 = vpop.f32.mrf.mxu1 }
 0x22b   : > { %1066 = vmatmul.bf16.gmra.mxu3 %v960_v29  ;;  %v704_v33 = vadd.f32 %v2223_v44, %v703_v30 }
 0x22c   : > { %v865_v31 = vpop.f32.mrf.mxu2 }
 0x22d   : > { %v866_v35 = vadd.f32 %v2257_v38, %v865_v31  ;;  %v744_v39 = vmax.f32 %v704_v33, 0.0  ;;  %v2291_v33 = vld [vmem:[#allocation7 + $0x3] ss:$0 sm:$0xff] }
 0x22f   : > { %v933_v42 = vmax.f32 %v866_v35, 0.0 }
 0x232   : > { %v705_v34 = vpop.f32.mrf.mxu1 }
 0x233   : > { %v706_v36 = vadd.f32 %v2223_v44, %v705_v34 }
 0x234   : > { %v867_v37 = vpop.f32.mrf.mxu2 }
 0x235   : > { %v745_v40 = vmax.f32 %v706_v36, 0.0  ;;  %v868_v41 = vadd.f32 %v2257_v38, %v867_v37 }
 0x237   : > { %v763_v43 = vpack.c.bf16 %v745_v40, %v744_v39  ;;  %v934_v45 = vmax.f32 %v868_v41, 0.0 }
 0x239   : > { %909 = vmatmul.bf16.gmra.mxu2 %v763_v43  ;;  %v961_v47 = vpack.c.bf16 %v934_v45, %v933_v42 }
 0x23a   : > { %v708_v48 = vpop.f32.mrf.mxu1 }
 0x23b   : > { %1071 = vmatmul.bf16.gmra.mxu3 %v961_v47  ;;  %v709_v51 = vadd.f32 %v2223_v44, %v708_v48 }
 0x23c   : > { %v870_v49 = vpop.f32.mrf.mxu2 }
 0x23d   : > { %v871_v53 = vadd.f32 %v2257_v38, %v870_v49  ;;  %v746_v56 = vmax.f32 %v709_v51, 0.0 }
 0x23f   : > { %v935_v59 = vmax.f32 %v871_v53, 0.0 }
 0x242   : > { %v710_v52 = vpop.f32.mrf.mxu1 }
 0x243   : > { %v711_v54 = vadd.f32 %v2223_v44, %v710_v52 }
 0x244   : > { %v872_v55 = vpop.f32.mrf.mxu2 }
 0x245   : > { %v747_v57 = vmax.f32 %v711_v54, 0.0  ;;  %v873_v58 = vadd.f32 %v2257_v38, %v872_v55 }
 0x247   : > { %v764_v60 = vpack.c.bf16 %v747_v57, %v746_v56  ;;  %v936_v61 = vmax.f32 %v873_v58, 0.0 }
 0x249   : > { %914 = vmatmul.bf16.gmra.mxu2 %v764_v60  ;;  %v962_v63 = vpack.c.bf16 %v936_v61, %v935_v59 }
 0x24a   : > { %v713_v0 = vpop.f32.mrf.mxu1 }
 0x24b   : > { %1076 = vmatmul.bf16.gmra.mxu3 %v962_v63  ;;  %v714_v3 = vadd.f32 %v2223_v44, %v713_v0 }
 0x24c   : > { %v875_v1 = vpop.f32.mrf.mxu2 }
 0x24d   : > { %v876_v5 = vadd.f32 %v2257_v38, %v875_v1  ;;  %v748_v8 = vmax.f32 %v714_v3, 0.0 }
 0x24f   : > { %v937_v11 = vmax.f32 %v876_v5, 0.0 }
 0x252   : > { %v715_v4 = vpop.f32.mrf.mxu1 }
 0x253   : > { %v716_v6 = vadd.f32 %v2223_v44, %v715_v4 }
 0x254   : > { %v877_v7 = vpop.f32.mrf.mxu2 }
 0x255   : > { %v749_v9 = vmax.f32 %v716_v6, 0.0  ;;  %v878_v10 = vadd.f32 %v2257_v38, %v877_v7 }
 0x257   : > { %v765_v12 = vpack.c.bf16 %v749_v9, %v748_v8  ;;  %v938_v13 = vmax.f32 %v878_v10, 0.0 }
 0x259   : > { %919 = vmatmul.bf16.gmra.mxu2 %v765_v12  ;;  %v963_v14 = vpack.c.bf16 %v938_v13, %v937_v11 }
 0x25b   : > { %1081 = vmatmul.bf16.gmra.mxu3 %v963_v14 }
 0x25c   : > { %v880_v16 = vpop.f32.mrf.mxu2 }
 0x25d   : > { %v881_v18 = vadd.f32 %v2257_v38, %v880_v16 }
 0x25f   : > { %v939_v20 = vmax.f32 %v881_v18, 0.0 }
 0x264   : > { %v882_v19 = vpop.f32.mrf.mxu2 }
 0x265   : > { %v883_v44 = vadd.f32 %v2257_v38, %v882_v19 }
 0x267   : > { %v940_v21 = vmax.f32 %v883_v44, 0.0 }
 0x269   : > { %v964_v23 = vpack.c.bf16 %v940_v21, %v939_v20 }
 0x26b   : > { %1086 = vmatmul.bf16.gmra.mxu3 %v964_v23 }
 0x26c   : > { %v885_v28 = vpop.f32.mrf.mxu2 }
 0x26d   : > { %v886_v24 = vadd.f32 %v2257_v38, %v885_v28 }
 0x26f   : > { %v941_v27 = vmax.f32 %v886_v24, 0.0 }
 0x274   : > { %v887_v25 = vpop.f32.mrf.mxu2 }
 0x275   : > { %v888_v26 = vadd.f32 %v2257_v38, %v887_v25 }
 0x277   : > { %v942_v29 = vmax.f32 %v888_v26, 0.0 }
 0x279   : > { %v965_v30 = vpack.c.bf16 %v942_v29, %v941_v27 }
 0x27b   : > { %1091 = vmatmul.bf16.gmra.mxu3 %v965_v30 }
 0x27c   : > { %v890_v31 = vpop.f32.mrf.mxu2 }
 0x27d   : > { %v891_v34 = vadd.f32 %v2257_v38, %v890_v31 }
 0x27e   : > { %v1052_v32 = vpop.f32.mrf.mxu3 }
 0x27f   : > { %v1053_v36 = vadd.f32 %v2291_v33, %v1052_v32  ;;  %v943_v40 = vmax.f32 %v891_v34, 0.0 }
 0x281   : > { %v1132_v43 = vmax.f32 %v1053_v36, 0.0 }
 0x284   : > { %v892_v35 = vpop.f32.mrf.mxu2 }
 0x285   : > { %v893_v37 = vadd.f32 %v2257_v38, %v892_v35 }
 0x286   : > { %v1054_v39 = vpop.f32.mrf.mxu3 }
 0x287   : > { %v944_v41 = vmax.f32 %v893_v37, 0.0  ;;  %v1055_v42 = vadd.f32 %v2291_v33, %v1054_v39 }
 0x289   : > { %v966_v45 = vpack.c.bf16 %v944_v41, %v943_v40  ;;  %v1133_v46 = vmax.f32 %v1055_v42, 0.0 }
 0x28b   : > { %1096 = vmatmul.bf16.gmra.mxu3 %v966_v45  ;;  %v1164_v47 = vpack.c.bf16 %v1133_v46, %v1132_v43 }
 0x28c   : > { %v895_v48 = vpop.f32.mrf.mxu2 }
 0x28d   : > { %1258 = vmatmul.bf16.vlgmr.msrb.gmra.mxu0 %v1164_v47  ;;  %v896_v50 = vadd.f32 %v2257_v38, %v895_v48 }
 0x28e   : > { %v1057_v49 = vpop.f32.mrf.mxu3 }
 0x28f   : > { %v1058_v52 = vadd.f32 %v2291_v33, %v1057_v49  ;;  %v945_v55 = vmax.f32 %v896_v50, 0.0 }
 0x291   : > { %v1134_v58 = vmax.f32 %v1058_v52, 0.0 }
 0x294   : > { %v897_v51 = vpop.f32.mrf.mxu2 }
 0x295   : > { %v898_v53 = vadd.f32 %v2257_v38, %v897_v51 }
 0x296   : > { %v1059_v54 = vpop.f32.mrf.mxu3 }
 0x297   : > { %v946_v56 = vmax.f32 %v898_v53, 0.0  ;;  %v1060_v57 = vadd.f32 %v2291_v33, %v1059_v54 }
 0x299   : > { %v967_v59 = vpack.c.bf16 %v946_v56, %v945_v55  ;;  %v1135_v60 = vmax.f32 %v1060_v57, 0.0 }
 0x29b   : > { %1101 = vmatmul.bf16.gmra.mxu3 %v967_v59  ;;  %v1165_v61 = vpack.c.bf16 %v1135_v60, %v1134_v58 }
 0x29c   : > { %v900_v62 = vpop.f32.mrf.mxu2 }
 0x29d   : > { %1263 = vmatmul.bf16.gmra.mxu0 %v1165_v61  ;;  %v901_v0 = vadd.f32 %v2257_v38, %v900_v62 }
 0x29e   : > { %v1062_v63 = vpop.f32.mrf.mxu3 }
 0x29f   : > { %v1063_v2 = vadd.f32 %v2291_v33, %v1062_v63  ;;  %v947_v5 = vmax.f32 %v901_v0, 0.0 }
 0x2a1   : > { %v1136_v8 = vmax.f32 %v1063_v2, 0.0 }
 0x2a4   : > { %v902_v1 = vpop.f32.mrf.mxu2 }
 0x2a5   : > { %v903_v3 = vadd.f32 %v2257_v38, %v902_v1 }
 0x2a6   : > { %v1064_v4 = vpop.f32.mrf.mxu3 }
 0x2a7   : > { %v948_v6 = vmax.f32 %v903_v3, 0.0  ;;  %v1065_v7 = vadd.f32 %v2291_v33, %v1064_v4 }
 0x2a9   : > { %v968_v9 = vpack.c.bf16 %v948_v6, %v947_v5  ;;  %v1137_v10 = vmax.f32 %v1065_v7, 0.0 }
 0x2ab   : > { %1106 = vmatmul.bf16.gmra.mxu3 %v968_v9  ;;  %v1166_v11 = vpack.c.bf16 %v1137_v10, %v1136_v8 }
 0x2ac   : > { %v905_v12 = vpop.f32.mrf.mxu2 }
 0x2ad   : > { %1268 = vmatmul.bf16.gmra.mxu0 %v1166_v11  ;;  %v906_v14 = vadd.f32 %v2257_v38, %v905_v12 }
 0x2ae   : > { %v1067_v13 = vpop.f32.mrf.mxu3 }
 0x2af   : > { %v1068_v16 = vadd.f32 %v2291_v33, %v1067_v13  ;;  %v949_v19 = vmax.f32 %v906_v14, 0.0 }
 0x2b1   : > { %v1138_v21 = vmax.f32 %v1068_v16, 0.0  ;;  %v2326_v16 = vld [vmem:[#allocation7 + $0x4] ss:$0 sm:$0xff] }
 0x2b4   : > { %v907_v15 = vpop.f32.mrf.mxu2 }
 0x2b5   : > { %v908_v17 = vadd.f32 %v2257_v38, %v907_v15 }
 0x2b6   : > { %v1069_v18 = vpop.f32.mrf.mxu3 }
 0x2b7   : > { %v950_v44 = vmax.f32 %v908_v17, 0.0  ;;  %v1070_v20 = vadd.f32 %v2291_v33, %v1069_v18 }
 0x2b9   : > { %v969_v22 = vpack.c.bf16 %v950_v44, %v949_v19  ;;  %v1139_v23 = vmax.f32 %v1070_v20, 0.0 }
 0x2bb   : > { %1111 = vmatmul.bf16.gmra.mxu3 %v969_v22  ;;  %v1167_v28 = vpack.c.bf16 %v1139_v23, %v1138_v21 }
 0x2bc   : > { %v910_v24 = vpop.f32.mrf.mxu2 }
 0x2bd   : > { %1273 = vmatmul.bf16.gmra.mxu0 %v1167_v28  ;;  %v911_v26 = vadd.f32 %v2257_v38, %v910_v24 }
 0x2be   : > { %v1072_v25 = vpop.f32.mrf.mxu3 }
 0x2bf   : > { %v1073_v29 = vadd.f32 %v2291_v33, %v1072_v25  ;;  %v951_v32 = vmax.f32 %v911_v26, 0.0 }
 0x2c1   : > { %v1140_v36 = vmax.f32 %v1073_v29, 0.0 }
 0x2c4   : > { %v912_v27 = vpop.f32.mrf.mxu2 }
 0x2c5   : > { %v913_v30 = vadd.f32 %v2257_v38, %v912_v27 }
 0x2c6   : > { %v1074_v31 = vpop.f32.mrf.mxu3 }
 0x2c7   : > { %v952_v34 = vmax.f32 %v913_v30, 0.0  ;;  %v1075_v35 = vadd.f32 %v2291_v33, %v1074_v31 }
 0x2c9   : > { %v970_v37 = vpack.c.bf16 %v952_v34, %v951_v32  ;;  %v1141_v39 = vmax.f32 %v1075_v35, 0.0 }
 0x2cb   : > { %1116 = vmatmul.bf16.gmra.mxu3 %v970_v37  ;;  %v1168_v40 = vpack.c.bf16 %v1141_v39, %v1140_v36 }
 0x2cc   : > { %v915_v41 = vpop.f32.mrf.mxu2 }
 0x2cd   : > { %1278 = vmatmul.bf16.gmra.mxu0 %v1168_v40  ;;  %v916_v43 = vadd.f32 %v2257_v38, %v915_v41 }
 0x2ce   : > { %v1077_v42 = vpop.f32.mrf.mxu3 }
 0x2cf   : > { %v1078_v46 = vadd.f32 %v2291_v33, %v1077_v42  ;;  %v953_v49 = vmax.f32 %v916_v43, 0.0 }
 0x2d1   : > { %v1142_v52 = vmax.f32 %v1078_v46, 0.0 }
 0x2d4   : > { %v917_v45 = vpop.f32.mrf.mxu2 }
 0x2d5   : > { %v918_v47 = vadd.f32 %v2257_v38, %v917_v45 }
 0x2d6   : > { %v1079_v48 = vpop.f32.mrf.mxu3 }
 0x2d7   : > { %v954_v50 = vmax.f32 %v918_v47, 0.0  ;;  %v1080_v51 = vadd.f32 %v2291_v33, %v1079_v48 }
 0x2d9   : > { %v971_v53 = vpack.c.bf16 %v954_v50, %v953_v49  ;;  %v1143_v54 = vmax.f32 %v1080_v51, 0.0 }
 0x2db   : > { %1121 = vmatmul.bf16.gmra.mxu3 %v971_v53  ;;  %v1169_v55 = vpack.c.bf16 %v1143_v54, %v1142_v52 }
 0x2dc   : > { %v920_v56 = vpop.f32.mrf.mxu2 }
 0x2dd   : > { %1283 = vmatmul.bf16.gmra.mxu0 %v1169_v55  ;;  %v921_v58 = vadd.f32 %v2257_v38, %v920_v56 }
 0x2de   : > { %v1082_v57 = vpop.f32.mrf.mxu3 }
 0x2df   : > { %v1083_v60 = vadd.f32 %v2291_v33, %v1082_v57  ;;  %v955_v63 = vmax.f32 %v921_v58, 0.0 }
 0x2e1   : > { %v1144_v2 = vmax.f32 %v1083_v60, 0.0 }
 0x2e4   : > { %v922_v59 = vpop.f32.mrf.mxu2 }
 0x2e5   : > { %v923_v61 = vadd.f32 %v2257_v38, %v922_v59 }
 0x2e6   : > { %v1084_v62 = vpop.f32.mrf.mxu3 }
 0x2e7   : > { %v956_v0 = vmax.f32 %v923_v61, 0.0  ;;  %v1085_v1 = vadd.f32 %v2291_v33, %v1084_v62 }
 0x2e9   : > { %v972_v3 = vpack.c.bf16 %v956_v0, %v955_v63  ;;  %v1145_v4 = vmax.f32 %v1085_v1, 0.0 }
 0x2eb   : > { %1126 = vmatmul.bf16.gmra.mxu3 %v972_v3  ;;  %v1170_v5 = vpack.c.bf16 %v1145_v4, %v1144_v2 }
 0x2ed   : > { %1288 = vmatmul.bf16.gmra.mxu0 %v1170_v5 }
 0x2ee   : > { %v1087_v6 = vpop.f32.mrf.mxu3 }
 0x2ef   : > { %v1088_v7 = vadd.f32 %v2291_v33, %v1087_v6 }
 0x2f1   : > { %v1146_v10 = vmax.f32 %v1088_v7, 0.0 }
 0x2f6   : > { %v1089_v8 = vpop.f32.mrf.mxu3 }
 0x2f7   : > { %v1090_v9 = vadd.f32 %v2291_v33, %v1089_v8 }
 0x2f9   : > { %v1147_v38 = vmax.f32 %v1090_v9, 0.0 }
 0x2fb   : > { %v1171_v11 = vpack.c.bf16 %v1147_v38, %v1146_v10 }
 0x2fd   : > { %1293 = vmatmul.bf16.gmra.mxu0 %v1171_v11 }
 0x2fe   : > { %v1092_v12 = vpop.f32.mrf.mxu3 }
 0x2ff   : > { %v1093_v13 = vadd.f32 %v2291_v33, %v1092_v12 }
 0x301   : > { %v1148_v17 = vmax.f32 %v1093_v13, 0.0 }
 0x306   : > { %v1094_v14 = vpop.f32.mrf.mxu3 }
 0x307   : > { %v1095_v15 = vadd.f32 %v2291_v33, %v1094_v14 }
 0x309   : > { %v1149_v18 = vmax.f32 %v1095_v15, 0.0 }
 0x30a   : > { %v1259_v19 = vpop.f32.mrf.mxu0 }
 0x30b   : > { %v1172_v44 = vpack.c.bf16 %v1149_v18, %v1148_v17  ;;  %v1260_v20 = vadd.f32 %v2326_v16, %v1259_v19 }
 0x30d   : > { %1339 = vst [vmem:[%s2329_s23] sm:$0xff] %v1260_v20  ;;  %1298 = vmatmul.bf16.gmra.mxu0 %v1172_v44 }
 0x30e   : > { %v1097_v21 = vpop.f32.mrf.mxu3 }
 0x30f   : > { %v1098_v28 = vadd.f32 %v2291_v33, %v1097_v21 }
 0x311   : > { %v1150_v26 = vmax.f32 %v1098_v28, 0.0 }
 0x312   : > { %v1261_v22 = vpop.f32.mrf.mxu0 }
 0x313   : > { %v1262_v23 = vadd.f32 %v2326_v16, %v1261_v22 }
 0x315   : > { %1340 = vst [vmem:[%s2329_s23 + $0x8] sm:$0xff] %v1262_v23 }
 0x316   : > { %v1099_v24 = vpop.f32.mrf.mxu3 }
 0x317   : > { %v1100_v25 = vadd.f32 %v2291_v33, %v1099_v24 }
 0x319   : > { %v1151_v27 = vmax.f32 %v1100_v25, 0.0 }
 0x31a   : > { %v1264_v29 = vpop.f32.mrf.mxu0 }
 0x31b   : > { %v1173_v30 = vpack.c.bf16 %v1151_v27, %v1150_v26  ;;  %v1265_v31 = vadd.f32 %v2326_v16, %v1264_v29 }
 0x31d   : > { %1341 = vst [vmem:[%s2329_s23 + $0x10] sm:$0xff] %v1265_v31  ;;  %1303 = vmatmul.bf16.gmra.mxu0 %v1173_v30 }
 0x31e   : > { %v1102_v32 = vpop.f32.mrf.mxu3 }
 0x31f   : > { %v1103_v36 = vadd.f32 %v2291_v33, %v1102_v32 }
 0x321   : > { %v1152_v40 = vmax.f32 %v1103_v36, 0.0 }
 0x322   : > { %v1266_v34 = vpop.f32.mrf.mxu0 }
 0x323   : > { %v1267_v35 = vadd.f32 %v2326_v16, %v1266_v34 }
 0x325   : > { %1342 = vst [vmem:[%s2329_s23 + $0x18] sm:$0xff] %v1267_v35 }
 0x326   : > { %v1104_v37 = vpop.f32.mrf.mxu3 }
 0x327   : > { %v1105_v39 = vadd.f32 %v2291_v33, %v1104_v37 }
 0x329   : > { %v1153_v41 = vmax.f32 %v1105_v39, 0.0 }
 0x32a   : > { %v1269_v42 = vpop.f32.mrf.mxu0 }
 0x32b   : > { %v1174_v43 = vpack.c.bf16 %v1153_v41, %v1152_v40  ;;  %v1270_v45 = vadd.f32 %v2326_v16, %v1269_v42 }
 0x32d   : > { %1343 = vst [vmem:[%s2329_s23 + $0x20] sm:$0xff] %v1270_v45  ;;  %1308 = vmatmul.bf16.gmra.mxu0 %v1174_v43 }
 0x32e   : > { %v1107_v46 = vpop.f32.mrf.mxu3 }
 0x32f   : > { %v1108_v49 = vadd.f32 %v2291_v33, %v1107_v46 }
 0x331   : > { %v1154_v52 = vmax.f32 %v1108_v49, 0.0 }
 0x332   : > { %v1271_v47 = vpop.f32.mrf.mxu0 }
 0x333   : > { %v1272_v48 = vadd.f32 %v2326_v16, %v1271_v47 }
 0x335   : > { %1344 = vst [vmem:[%s2329_s23 + $0x28] sm:$0xff] %v1272_v48 }
 0x336   : > { %v1109_v50 = vpop.f32.mrf.mxu3 }
 0x337   : > { %v1110_v51 = vadd.f32 %v2291_v33, %v1109_v50 }
 0x339   : > { %v1155_v53 = vmax.f32 %v1110_v51, 0.0 }
 0x33a   : > { %v1274_v54 = vpop.f32.mrf.mxu0 }
 0x33b   : > { %v1175_v55 = vpack.c.bf16 %v1155_v53, %v1154_v52  ;;  %v1275_v56 = vadd.f32 %v2326_v16, %v1274_v54 }
 0x33d   : > { %1345 = vst [vmem:[%s2329_s23 + $0x30] sm:$0xff] %v1275_v56  ;;  %1313 = vmatmul.bf16.gmra.mxu0 %v1175_v55 }
 0x33e   : > { %v1112_v57 = vpop.f32.mrf.mxu3 }
 0x33f   : > { %v1113_v60 = vadd.f32 %v2291_v33, %v1112_v57 }
 0x341   : > { %v1156_v63 = vmax.f32 %v1113_v60, 0.0 }
 0x342   : > { %v1276_v58 = vpop.f32.mrf.mxu0 }
 0x343   : > { %v1277_v59 = vadd.f32 %v2326_v16, %v1276_v58 }
 0x345   : > { %1346 = vst [vmem:[%s2329_s23 + $0x38] sm:$0xff] %v1277_v59 }
 0x346   : > { %v1114_v61 = vpop.f32.mrf.mxu3 }
 0x347   : > { %v1115_v62 = vadd.f32 %v2291_v33, %v1114_v61 }
 0x349   : > { %v1157_v0 = vmax.f32 %v1115_v62, 0.0 }
 0x34a   : > { %v1279_v1 = vpop.f32.mrf.mxu0 }
 0x34b   : > { %v1176_v2 = vpack.c.bf16 %v1157_v0, %v1156_v63  ;;  %v1280_v3 = vadd.f32 %v2326_v16, %v1279_v1 }
 0x34d   : > { %1347 = vst [vmem:[%s2329_s23 + $0x40] sm:$0xff] %v1280_v3  ;;  %1318 = vmatmul.bf16.gmra.mxu0 %v1176_v2 }
 0x34e   : > { %v1117_v4 = vpop.f32.mrf.mxu3 }
 0x34f   : > { %v1118_v7 = vadd.f32 %v2291_v33, %v1117_v4 }
 0x351   : > { %v1158_v10 = vmax.f32 %v1118_v7, 0.0 }
 0x352   : > { %v1281_v5 = vpop.f32.mrf.mxu0 }
 0x353   : > { %v1282_v6 = vadd.f32 %v2326_v16, %v1281_v5 }
 0x355   : > { %1348 = vst [vmem:[%s2329_s23 + $0x48] sm:$0xff] %v1282_v6 }
 0x356   : > { %v1119_v8 = vpop.f32.mrf.mxu3 }
 0x357   : > { %v1120_v9 = vadd.f32 %v2291_v33, %v1119_v8 }
 0x359   : > { %v1159_v38 = vmax.f32 %v1120_v9, 0.0 }
 0x35a   : > { %v1284_v11 = vpop.f32.mrf.mxu0 }
 0x35b   : > { %v1177_v12 = vpack.c.bf16 %v1159_v38, %v1158_v10  ;;  %v1285_v13 = vadd.f32 %v2326_v16, %v1284_v11 }
 0x35d   : > { %1349 = vst [vmem:[%s2329_s23 + $0x50] sm:$0xff] %v1285_v13  ;;  %1323 = vmatmul.bf16.gmra.mxu0 %v1177_v12 }
 0x35e   : > { %v1122_v14 = vpop.f32.mrf.mxu3 }
 0x35f   : > { %v1123_v18 = vadd.f32 %v2291_v33, %v1122_v14 }
 0x361   : > { %v1160_v20 = vmax.f32 %v1123_v18, 0.0 }
 0x362   : > { %v1286_v15 = vpop.f32.mrf.mxu0 }
 0x363   : > { %v1287_v17 = vadd.f32 %v2326_v16, %v1286_v15 }
 0x365   : > { %1350 = vst [vmem:[%s2329_s23 + $0x58] sm:$0xff] %v1287_v17 }
 0x366   : > { %v1124_v19 = vpop.f32.mrf.mxu3 }
 0x367   : > { %v1125_v44 = vadd.f32 %v2291_v33, %v1124_v19 }
 0x369   : > { %v1161_v21 = vmax.f32 %v1125_v44, 0.0 }
 0x36a   : > { %v1289_v22 = vpop.f32.mrf.mxu0 }
 0x36b   : > { %v1178_v23 = vpack.c.bf16 %v1161_v21, %v1160_v20  ;;  %v1290_v28 = vadd.f32 %v2326_v16, %v1289_v22 }
 0x36d   : > { %1351 = vst [vmem:[%s2329_s23 + $0x60] sm:$0xff] %v1290_v28  ;;  %1328 = vmatmul.bf16.gmra.mxu0 %v1178_v23 }
 0x36e   : > { %v1127_v24 = vpop.f32.mrf.mxu3 }
 0x36f   : > { %v1128_v27 = vadd.f32 %v2291_v33, %v1127_v24 }
 0x371   : > { %v1162_v31 = vmax.f32 %v1128_v27, 0.0 }
 0x372   : > { %v1291_v25 = vpop.f32.mrf.mxu0 }
 0x373   : > { %v1292_v26 = vadd.f32 %v2326_v16, %v1291_v25 }
 0x375   : > { %1352 = vst [vmem:[%s2329_s23 + $0x68] sm:$0xff] %v1292_v26 }
 0x376   : > { %v1129_v29 = vpop.f32.mrf.mxu3 }
 0x377   : > { %v1130_v30 = vadd.f32 %v2291_v33, %v1129_v29 }
 0x379   : > { %v1163_v32 = vmax.f32 %v1130_v30, 0.0 }
 0x37a   : > { %v1294_v34 = vpop.f32.mrf.mxu0 }
 0x37b   : > { %v1179_v35 = vpack.c.bf16 %v1163_v32, %v1162_v31  ;;  %v1295_v36 = vadd.f32 %v2326_v16, %v1294_v34 }
 0x37d   : > { %1353 = vst [vmem:[%s2329_s23 + $0x70] sm:$0xff] %v1295_v36  ;;  %1333 = vmatmul.bf16.gmra.mxu0 %v1179_v35 }
 0x382   : > { %v1296_v37 = vpop.f32.mrf.mxu0 }
 0x383   : > { %v1297_v39 = vadd.f32 %v2326_v16, %v1296_v37 }
 0x385   : > { %1354 = vst [vmem:[%s2329_s23 + $0x78] sm:$0xff] %v1297_v39 }
 0x38a   : > { %v1299_v40 = vpop.f32.mrf.mxu0 }
 0x38b   : > { %v1300_v41 = vadd.f32 %v2326_v16, %v1299_v40 }
 0x38d   : > { %1355 = vst [vmem:[%s2329_s23 + $0x80] sm:$0xff] %v1300_v41 }
 0x392   : > { %v1301_v33 = vpop.f32.mrf.mxu0 }
 0x393   : > { %v1302_v42 = vadd.f32 %v2326_v16, %v1301_v33 }
 0x395   : > { %1356 = vst [vmem:[%s2329_s23 + $0x88] sm:$0xff] %v1302_v42 }
 0x39a   : > { %v1304_v43 = vpop.f32.mrf.mxu0 }
 0x39b   : > { %v1305_v45 = vadd.f32 %v2326_v16, %v1304_v43 }
 0x39d   : > { %1357 = vst [vmem:[%s2329_s23 + $0x90] sm:$0xff] %v1305_v45 }
 0x3a2   : > { %v1306_v46 = vpop.f32.mrf.mxu0 }
 0x3a3   : > { %v1307_v47 = vadd.f32 %v2326_v16, %v1306_v46 }
 0x3a5   : > { %1358 = vst [vmem:[%s2329_s23 + $0x98] sm:$0xff] %v1307_v47 }
 0x3aa   : > { %v1309_v48 = vpop.f32.mrf.mxu0 }
 0x3ab   : > { %v1310_v49 = vadd.f32 %v2326_v16, %v1309_v48 }
 0x3ad   : > { %1359 = vst [vmem:[%s2329_s23 + $0xa0] sm:$0xff] %v1310_v49 }
 0x3b2   : > { %v1311_v50 = vpop.f32.mrf.mxu0 }
 0x3b3   : > { %v1312_v51 = vadd.f32 %v2326_v16, %v1311_v50 }
 0x3b5   : > { %1360 = vst [vmem:[%s2329_s23 + $0xa8] sm:$0xff] %v1312_v51 }
 0x3ba   : > { %v1314_v52 = vpop.f32.mrf.mxu0 }
 0x3bb   : > { %v1315_v53 = vadd.f32 %v2326_v16, %v1314_v52 }
 0x3bd   : > { %1361 = vst [vmem:[%s2329_s23 + $0xb0] sm:$0xff] %v1315_v53 }
 0x3c2   : > { %v1316_v54 = vpop.f32.mrf.mxu0 }
 0x3c3   : > { %v1317_v55 = vadd.f32 %v2326_v16, %v1316_v54 }
 0x3c5   : > { %1362 = vst [vmem:[%s2329_s23 + $0xb8] sm:$0xff] %v1317_v55 }
 0x3ca   : > { %v1319_v56 = vpop.f32.mrf.mxu0 }
 0x3cb   : > { %v1320_v57 = vadd.f32 %v2326_v16, %v1319_v56 }
 0x3cd   : > { %1363 = vst [vmem:[%s2329_s23 + $0xc0] sm:$0xff] %v1320_v57 }
 0x3d2   : > { %v1321_v58 = vpop.f32.mrf.mxu0 }
 0x3d3   : > { %v1322_v59 = vadd.f32 %v2326_v16, %v1321_v58 }
 0x3d5   : > { %1364 = vst [vmem:[%s2329_s23 + $0xc8] sm:$0xff] %v1322_v59 }
 0x3da   : > { %v1324_v60 = vpop.f32.mrf.mxu0 }
 0x3db   : > { %v1325_v61 = vadd.f32 %v2326_v16, %v1324_v60 }
 0x3dd   : > { %1365 = vst [vmem:[%s2329_s23 + $0xd0] sm:$0xff] %v1325_v61 }
 0x3e2   : > { %v1326_v62 = vpop.f32.mrf.mxu0 }
 0x3e3   : > { %v1327_v63 = vadd.f32 %v2326_v16, %v1326_v62 }
 0x3e5   : > { %1366 = vst [vmem:[%s2329_s23 + $0xd8] sm:$0xff] %v1327_v63 }
 0x3ea   : > { %v1329_v0 = vpop.f32.mrf.mxu0 }
 0x3eb   : > { %v1330_v1 = vadd.f32 %v2326_v16, %v1329_v0 }
 0x3ed   : > { %1367 = vst [vmem:[%s2329_s23 + $0xe0] sm:$0xff] %v1330_v1 }
 0x3f2   : > { %v1331_v2 = vpop.f32.mrf.mxu0 }
 0x3f3   : > { %v1332_v3 = vadd.f32 %v2326_v16, %v1331_v2 }
 0x3f5   : > { %1368 = vst [vmem:[%s2329_s23 + $0xe8] sm:$0xff] %v1332_v3 }
 0x3fa   : > { %v1334_v4 = vpop.f32.mrf.mxu0 }
 0x3fb   : > { %v1335_v5 = vadd.f32 %v2326_v16, %v1334_v4 }
 0x3fd   : > { %1369 = vst [vmem:[%s2329_s23 + $0xf0] sm:$0xff] %v1335_v5 }
 0x402   : > { %v1336_v6 = vpop.f32.mrf.mxu0 }
 0x403   : > { %v1337_v7 = vadd.f32 %v2326_v16, %v1336_v6 }
 0x405   : > { %1370 = vst [vmem:[%s2329_s23 + $0xf8] sm:$0xff] %v1337_v7 }
 0x406   : > { %1998 = shalt.err (!%p1995_p10)
}
 0x407   : > { %s2049_s20 = smov 128   ;;  %s2050_s27 = smov 8  }
 0x408   : > { %1813 = dma.vmem_to_hbm [thread:$0]  (%p2143_p5), %s1385_s5, 4096, %s1387_s6, %s1372_s9, %s2049_s20, %s2049_s20, %s2050_s27  }
 0x409 PF: > { %s1401_s7 = sand.u32 1, %s2029_s12   ;;  %p2451_p12 = scmp.ge.s32.totalorder %s2041_s15, 2 }
 0x40a   : > { %s1402_s18 = scalar_lea.sflag [#allocation4], %s1401_s7 }
 0x40b   : > { %p1827_p13 = pnand %p2451_p12, %p2106_p6 }
 0x40d   : > { %p1828_p0 = pneg %p1827_p13 }
 0x40f   : > { %2024 = dma.done.wait (%p1828_p0), %s1402_s18, 4096  }
 0x410   : > { %2026 = vsyncadd (%p1828_p0), %s1402_s18, 4294963200  ;;  %p17_p3 = scmp.ge.s32.totalorder %s2130_s8, 4   ;;  %s2452_s12 = smov %s2033_s13 }
 0x411   : > { %s2453_s13 = smov %s2037_s14  ;;  %s2454_s14 = smov %s2139_s11 }
 0x412   : > { %s2455_s15 = smov %s2130_s8  ;;  %19 = sbr.rel (!%p17_p3) target bundleno = 6 (0x6), region = 93 }
 0x417   :  { %1408 = vsyncpa [#allocation3], 1 }
 0x418   :  { %1410 = vsyncpa [#allocation3 + $0x1], 1 }
 0x419   :  { %1411 = vsyncpa [#allocation6], 1 }
 0x41a   :  { %1412 = vsyncpa [#allocation4], 1 }
 0x41b   :  { %1414 = vsyncpa [#allocation4 + $0x1], 1 }

</bundles_post_ra>
